<compile_context>
chip_gen: v6e
topology: v6e:2x2x1
jax: 0.10.0
libtpu: 0.0.40
codegen_flags: <defaults>
</compile_context>

<pallas_src>
import functools

import jax
import jax.numpy as jnp
from jax.experimental import pallas as pl
from jax.experimental.pallas import tpu as pltpu


def _block_kernel(x_ref, m1_ref, m2_ref, s0_ref, o0_ref, s1_ref, o1_ref,
                  s2_ref, o2_ref, out_ref, *, img_h):
    """Fused BN -> conv3x3 -> BN -> conv3x3 -> BN -> ReLU for a strip of images.

    x_ref   : (rows, W*Cin)       rows = images_per_block * H, lanes = W*Cin
    m1_ref  : (3*W*Cin,  W*Cmid)  dy-stacked banded conv1 weights (bf16)
    m2_ref  : (3*W*Cmid, W*Cout)  dy-stacked banded conv2 weights (bf16)
    sK/oK   : (1, W*C)            folded BN scale / offset, lane-tiled
    out_ref : (rows, W*Cout)
    """
    rows = x_ref.shape[0]

    # Hoisted per-row image-boundary masks, shared by both convs.
    row = jax.lax.broadcasted_iota(jnp.int32, (rows, 1), 0)
    is_top = (row % img_h) == 0             # first row of each image
    is_bot = (row % img_h) == img_h - 1     # last row of each image

    def conv3x3(a_f32, m_ref):
        # Stack the three dy taps along K: [in[r-1], in[r], in[r+1]] on the
        # lane axis (zeroed across image boundaries), then a single
        # (rows, 3*W*Ci) @ (3*W*Ci, W*Co) bf16 matmul with f32 accumulation.
        a_up = jnp.where(is_top, 0.0, pltpu.roll(a_f32, shift=1, axis=0))
        a_dn = jnp.where(is_bot, 0.0,
                         pltpu.roll(a_f32, shift=rows - 1, axis=0))
        a_cat = jnp.concatenate([a_up, a_f32, a_dn],
                                axis=1).astype(jnp.bfloat16)
        return jnp.dot(a_cat, m_ref[...], preferred_element_type=jnp.float32)

    # BN(input): folded per-channel affine (lane-tiled vectors).
    x = x_ref[...] * s0_ref[...] + o0_ref[...]
    # conv1 + BN1 (conv1 bias folded into o1 in the wrapper)
    mid = conv3x3(x, m1_ref) * s1_ref[...] + o1_ref[...]
    # conv2 + BN2 + ReLU (conv2 bias folded into o2 in the wrapper)
    y = conv3x3(mid, m2_ref) * s2_ref[...] + o2_ref[...]
    out_ref[...] = jnp.maximum(y, 0.0).astype(out_ref.dtype)


def _stacked_banded_weights(w_hwio, width):
    """(3, 3, Ci, Co) conv kernel -> (3*W*Ci, W*Co) dy-stacked banded matrix.

    band[dy][wi*Ci + ci, wo*Co + co] = w[dy, wi - wo + 1, ci, co] when the
    column tap is in range, else 0 — the zero padding along W is built into
    the band.  The three dy bands are stacked along the contraction axis so
    one matmul per conv handles all taps.
    NOTE: the dense band wastes ~W/3x MXU FLOPs; acceptable at W=16 to fill K,
    but for W >= 64 the W axis should be tiled into sub-bands instead.
    """
    _, _, ci, co = w_hwio.shape
    taps = []
    for dy in range(3):
        m = jnp.zeros((width * ci, width * co), jnp.float32)
        for dx in range(3):
            # shift[w_in, w_out] = 1  iff  w_in == w_out + dx - 1
            shift = jnp.eye(width, k=1 - dx, dtype=jnp.float32)
            m = m + jnp.einsum('io,ck->icok', shift,
                               w_hwio[dy, dx]).reshape(width * ci, width * co)
        taps.append(m)
    return jnp.concatenate(taps, axis=0).astype(jnp.bfloat16)


def block_forward(x_nhwc, params, *, images_per_block=None):
    """x_nhwc: (B, H, W, Cin) float32; params: tuple as built in __main__."""
    s0, o0, w1, b1, s1, o1, w2, b2, s2, o2 = params
    B, H, W, Cin = x_nhwc.shape
    Cmid, Cout = w1.shape[3], w2.shape[3]

    if images_per_block is None:
        # Aim for >= 2 whole-image grid steps (v7x megacore + DMA/compute
        # overlap), capping each step at ~1024 image rows for VMEM headroom
        # (sized for v7x's 64 MiB physical / 32 MiB scoped default).
        target = max(1, min(max(1, B // 2), max(1, 1024 // H)))
        images_per_block = 1
        for d in range(target, 0, -1):
            if B % d == 0:
                images_per_block = d
                break
    assert B % images_per_block == 0
    rows = images_per_block * H

    # BlockSpec (8,128) constraints -> unmasked vld/vst, no lowering surprises.
    assert rows % 8 == 0, "images_per_block * H must be a multiple of 8"
    for lanes in (W * Cin, W * Cmid, W * Cout):
        assert lanes % 128 == 0, "W*C lane widths must be multiples of 128"

    # dy-stacked banded conv weights (built once, resident in VMEM).
    m1 = _stacked_banded_weights(w1, W)      # (3*W*Cin,  W*Cmid)
    m2 = _stacked_banded_weights(w2, W)      # (3*W*Cmid, W*Cout)

    flat = lambda v: jnp.reshape(v, (-1,)).astype(jnp.float32)

    def lane_tile(v):
        return jnp.tile(flat(v), W).reshape(1, -1)

    s0t, o0t = lane_tile(s0), lane_tile(o0)
    s1t = lane_tile(s1)
    o1t = lane_tile(flat(s1) * flat(b1) + flat(o1))    # fold conv1 bias
    s2t = lane_tile(s2)
    o2t = lane_tile(flat(s2) * flat(b2) + flat(o2))    # fold conv2 bias

    x2d = x_nhwc.reshape(B * H, W * Cin)               # lane-dense input slab

    kernel = functools.partial(_block_kernel, img_h=H)
    out2d = pl.pallas_call(
        kernel,
        out_shape=jax.ShapeDtypeStruct((B * H, W * Cout), jnp.float32),
        grid_spec=pltpu.PrefetchScalarGridSpec(
            num_scalar_prefetch=0,
            grid=(B // images_per_block,),
            in_specs=[
                pl.BlockSpec((rows, W * Cin), lambda i: (i, 0)),            # x
                pl.BlockSpec((3 * W * Cin, W * Cmid), lambda i: (0, 0)),    # m1
                pl.BlockSpec((3 * W * Cmid, W * Cout), lambda i: (0, 0)),   # m2
                pl.BlockSpec((1, W * Cin), lambda i: (0, 0)),               # s0
                pl.BlockSpec((1, W * Cin), lambda i: (0, 0)),               # o0
                pl.BlockSpec((1, W * Cmid), lambda i: (0, 0)),              # s1
                pl.BlockSpec((1, W * Cmid), lambda i: (0, 0)),              # o1
                pl.BlockSpec((1, W * Cout), lambda i: (0, 0)),              # s2
                pl.BlockSpec((1, W * Cout), lambda i: (0, 0)),              # o2
            ],
            out_specs=pl.BlockSpec((rows, W * Cout), lambda i: (i, 0)),
        ),
        compiler_params=pltpu.CompilerParams(
            dimension_semantics=("parallel",)),
    )(x2d, m1, m2, s0t, o0t, s1t, o1t, s2t, o2t)
    return out2d.reshape(B, H, W, Cout)


def _bn_affine(gamma, beta, mean, var, eps=1e-5):
    scale = gamma / jnp.sqrt(var + eps)
    offset = beta - mean * scale
    return scale.reshape(1, -1), offset.reshape(1, -1)


def _reference(x, params):
    """Pure-JAX NHWC reference matching the kernel's bf16-MXU / f32-accumulate
    dtype choices, so the check validates kernel structure to tight tolerance."""
    s0, o0, w1, b1, s1, o1, w2, b2, s2, o2 = params

    def bc(p):
        return jnp.reshape(p, (1, 1, 1, -1))

    dn = ('NHWC', 'HWIO', 'NHWC')
    y = x * bc(s0) + bc(o0)
    y = jax.lax.conv_general_dilated(
        y.astype(jnp.bfloat16), w1.astype(jnp.bfloat16), (1, 1), 'SAME',
        dimension_numbers=dn, preferred_element_type=jnp.float32) + bc(b1)
    y = y * bc(s1) + bc(o1)
    y = jax.lax.conv_general_dilated(
        y.astype(jnp.bfloat16), w2.astype(jnp.bfloat16), (1, 1), 'SAME',
        dimension_numbers=dn, preferred_element_type=jnp.float32) + bc(b2)
    y = y * bc(s2) + bc(o2)
    return jnp.maximum(y, 0.0)


if __name__ == "__main__":
    # Small shapes: 4 inputs of (B, 4, H, W) NCHW -> in_channel = 16.
    B, Cpart, H, W = 2, 4, 16, 16
    Cin, Cmid, Cout = 4 * Cpart, 16, 8

    key = jax.random.PRNGKey(0)
    ks = jax.random.split(key, 12)

    # the four NCHW inputs (as the PyTorch module receives them)
    inputs_nchw = [jax.random.normal(ks[i], (B, Cpart, H, W), jnp.float32)
                   for i in range(4)]
    # concat on channel dim (torch.cat dim=1), then NCHW -> NHWC for the kernel
    x_nchw = jnp.concatenate(inputs_nchw, axis=1)           # (B, Cin, H, W)
    x_nhwc = jnp.transpose(x_nchw, (0, 2, 3, 1))            # (B, H, W, Cin)

    # synthetic eval-mode BN running stats, folded to affine
    def bn_params(k, c):
        k1, k2, k3, k4 = jax.random.split(k, 4)
        gamma = 1.0 + 0.1 * jax.random.normal(k1, (c,), jnp.float32)
        beta = 0.1 * jax.random.normal(k2, (c,), jnp.float32)
        mean = 0.1 * jax.random.normal(k3, (c,), jnp.float32)
        var = 1.0 + 0.1 * jax.random.uniform(k4, (c,), jnp.float32)
        return _bn_affine(gamma, beta, mean, var)

    s0, o0 = bn_params(ks[4], Cin)
    s1, o1 = bn_params(ks[5], Cmid)
    s2, o2 = bn_params(ks[6], Cout)

    # conv weights in HWIO (PyTorch OIHW would be transposed (2,3,1,0))
    w1 = 0.1 * jax.random.normal(ks[7], (3, 3, Cin, Cmid), jnp.float32)
    b1 = 0.1 * jax.random.normal(ks[8], (Cmid,), jnp.float32).reshape(1, -1)
    w2 = 0.1 * jax.random.normal(ks[9], (3, 3, Cmid, Cout), jnp.float32)
    b2 = 0.1 * jax.random.normal(ks[10], (Cout,), jnp.float32).reshape(1, -1)

    params = (s0, o0, w1, b1, s1, o1, w2, b2, s2, o2)

    out = block_forward(x_nhwc, params)
    out = jax.block_until_ready(out)

    ref = jax.block_until_ready(_reference(x_nhwc, params))
    if not bool(jnp.allclose(out, ref, atol=2e-2, rtol=2e-2)):
        raise RuntimeError("Pallas kernel does not match JAX reference")

    print("KERNEL_OK")
</pallas_src>

<mosaic_0001>
module attributes {stable_mosaic.version = 11 : i64} {
  func.func @_block_kernel(%arg0: i32, %arg1: memref<16x256xf32, #tpu.memory_space<vmem>>, %arg2: memref<768x256xbf16, #tpu.memory_space<vmem>>, %arg3: memref<768x128xbf16, #tpu.memory_space<vmem>>, %arg4: memref<1x256xf32, #tpu.memory_space<vmem>>, %arg5: memref<1x256xf32, #tpu.memory_space<vmem>>, %arg6: memref<1x256xf32, #tpu.memory_space<vmem>>, %arg7: memref<1x256xf32, #tpu.memory_space<vmem>>, %arg8: memref<1x128xf32, #tpu.memory_space<vmem>>, %arg9: memref<1x128xf32, #tpu.memory_space<vmem>>, %arg10: memref<16x128xf32, #tpu.memory_space<vmem>>) attributes {dimension_semantics = [#tpu.dimension_semantics<parallel>], iteration_bounds = array<i64: 2>, scalar_prefetch = 0 : i64, scratch_operands = 0 : i64, tpu.core_type = #tpu.core_type<tc>, window_params = [{transform_indices = @transform_0, window_bounds = array<i64: 16, 256>}, {pipeline_mode = #tpu.pipeline_mode<synchronous>, transform_indices = @transform_1, window_bounds = array<i64: 768, 256>}, {pipeline_mode = #tpu.pipeline_mode<synchronous>, transform_indices = @transform_2, window_bounds = array<i64: 768, 128>}, {pipeline_mode = #tpu.pipeline_mode<synchronous>, transform_indices = @transform_3, window_bounds = array<i64: 1, 256>}, {pipeline_mode = #tpu.pipeline_mode<synchronous>, transform_indices = @transform_4, window_bounds = array<i64: 1, 256>}, {pipeline_mode = #tpu.pipeline_mode<synchronous>, transform_indices = @transform_5, window_bounds = array<i64: 1, 256>}, {pipeline_mode = #tpu.pipeline_mode<synchronous>, transform_indices = @transform_6, window_bounds = array<i64: 1, 256>}, {pipeline_mode = #tpu.pipeline_mode<synchronous>, transform_indices = @transform_7, window_bounds = array<i64: 1, 128>}, {pipeline_mode = #tpu.pipeline_mode<synchronous>, transform_indices = @transform_8, window_bounds = array<i64: 1, 128>}, {transform_indices = @transform_9, window_bounds = array<i64: 16, 128>}]} {
    %0 = tpu.iota {dimensions = array<i32: 0>} : vector<16x1xi32>
    %c16_i32 = arith.constant 16 : i32
    %c0_i32 = arith.constant 0 : i32
    %1 = arith.cmpi eq, %c16_i32, %c0_i32 : i32
    %c1_i32 = arith.constant 1 : i32
    %2 = arith.select %1, %c1_i32, %c16_i32 : i32
    %3 = vector.broadcast %2 : i32 to vector<16x1xi32>
    %4 = arith.remsi %0, %3 : vector<16x1xi32>
    %c0_i32_0 = arith.constant 0 : i32
    %5 = vector.broadcast %c0_i32_0 : i32 to vector<16x1xi32>
    %6 = arith.cmpi ne, %4, %5 : vector<16x1xi32>
    %c0_i32_1 = arith.constant 0 : i32
    %7 = vector.broadcast %c0_i32_1 : i32 to vector<16x1xi32>
    %8 = arith.cmpi slt, %4, %7 : vector<16x1xi32>
    %c0_i32_2 = arith.constant 0 : i32
    %9 = arith.cmpi slt, %2, %c0_i32_2 : i32
    %10 = vector.broadcast %9 : i1 to vector<16x1xi1>
    %11 = vector.broadcast %10 : vector<16x1xi1> to vector<16x1xi1>
    %12 = arith.xori %8, %11 : vector<16x1xi1>
    %13 = arith.andi %12, %6 : vector<16x1xi1>
    %14 = vector.broadcast %2 : i32 to vector<16x1xi32>
    %15 = arith.addi %4, %14 : vector<16x1xi32>
    %16 = arith.select %13, %15, %4 : vector<16x1xi1>, vector<16x1xi32>
    %c0_i32_3 = arith.constant 0 : i32
    %17 = vector.broadcast %c0_i32_3 : i32 to vector<16x1xi32>
    %18 = arith.cmpi eq, %16, %17 : vector<16x1xi32>
    %c16_i32_4 = arith.constant 16 : i32
    %c0_i32_5 = arith.constant 0 : i32
    %19 = arith.cmpi eq, %c16_i32_4, %c0_i32_5 : i32
    %c1_i32_6 = arith.constant 1 : i32
    %20 = arith.select %19, %c1_i32_6, %c16_i32_4 : i32
    %21 = vector.broadcast %20 : i32 to vector<16x1xi32>
    %22 = arith.remsi %0, %21 : vector<16x1xi32>
    %c0_i32_7 = arith.constant 0 : i32
    %23 = vector.broadcast %c0_i32_7 : i32 to vector<16x1xi32>
    %24 = arith.cmpi ne, %22, %23 : vector<16x1xi32>
    %c0_i32_8 = arith.constant 0 : i32
    %25 = vector.broadcast %c0_i32_8 : i32 to vector<16x1xi32>
    %26 = arith.cmpi slt, %22, %25 : vector<16x1xi32>
    %c0_i32_9 = arith.constant 0 : i32
    %27 = arith.cmpi slt, %20, %c0_i32_9 : i32
    %28 = vector.broadcast %27 : i1 to vector<16x1xi1>
    %29 = vector.broadcast %28 : vector<16x1xi1> to vector<16x1xi1>
    %30 = arith.xori %26, %29 : vector<16x1xi1>
    %31 = arith.andi %30, %24 : vector<16x1xi1>
    %32 = vector.broadcast %20 : i32 to vector<16x1xi32>
    %33 = arith.addi %22, %32 : vector<16x1xi32>
    %34 = arith.select %31, %33, %22 : vector<16x1xi1>, vector<16x1xi32>
    %c15_i32 = arith.constant 15 : i32
    %35 = vector.broadcast %c15_i32 : i32 to vector<16x1xi32>
    %36 = arith.cmpi eq, %34, %35 : vector<16x1xi32>
    %c0 = arith.constant 0 : index
    %c0_10 = arith.constant 0 : index
    %37 = vector.load %arg1[%c0, %c0_10] : memref<16x256xf32, #tpu.memory_space<vmem>>, vector<16x256xf32>
    %c0_11 = arith.constant 0 : index
    %c0_12 = arith.constant 0 : index
    %38 = vector.load %arg4[%c0_11, %c0_12] : memref<1x256xf32, #tpu.memory_space<vmem>>, vector<1x256xf32>
    %39 = vector.broadcast %38 : vector<1x256xf32> to vector<16x256xf32>
    %40 = arith.mulf %37, %39 : vector<16x256xf32>
    %c0_13 = arith.constant 0 : index
    %c0_14 = arith.constant 0 : index
    %41 = vector.load %arg5[%c0_13, %c0_14] : memref<1x256xf32, #tpu.memory_space<vmem>>, vector<1x256xf32>
    %42 = vector.broadcast %41 : vector<1x256xf32> to vector<16x256xf32>
    %43 = arith.addf %40, %42 : vector<16x256xf32>
    %c1_i32_15 = arith.constant 1 : i32
    %44 = tpu.dynamic_rotate %43 by %c1_i32_15 dim 0 : vector<16x256xf32>, i32 -> vector<16x256xf32>
    %cst = arith.constant 0.000000e+00 : f32
    %45 = vector.shape_cast %18 : vector<16x1xi1> to vector<16x1xi1>
    %46 = vector.broadcast %45 : vector<16x1xi1> to vector<16x256xi1>
    %47 = vector.broadcast %cst : f32 to vector<16x256xf32>
    %48 = arith.select %46, %47, %44 : vector<16x256xi1>, vector<16x256xf32>
    %c15_i32_16 = arith.constant 15 : i32
    %49 = tpu.dynamic_rotate %43 by %c15_i32_16 dim 0 : vector<16x256xf32>, i32 -> vector<16x256xf32>
    %cst_17 = arith.constant 0.000000e+00 : f32
    %50 = vector.shape_cast %36 : vector<16x1xi1> to vector<16x1xi1>
    %51 = vector.broadcast %50 : vector<16x1xi1> to vector<16x256xi1>
    %52 = vector.broadcast %cst_17 : f32 to vector<16x256xf32>
    %53 = arith.select %51, %52, %49 : vector<16x256xi1>, vector<16x256xf32>
    %54 = tpu.concatenate %48, %43, %53 in 1 : vector<16x256xf32>, vector<16x256xf32>, vector<16x256xf32> -> vector<16x768xf32>
    %55 = arith.truncf %54 : vector<16x768xf32> to vector<16x768xbf16>
    %c0_18 = arith.constant 0 : index
    %c0_19 = arith.constant 0 : index
    %56 = vector.load %arg2[%c0_18, %c0_19] : memref<768x256xbf16, #tpu.memory_space<vmem>>, vector<768x256xbf16>
    %cst_20 = arith.constant dense<0.000000e+00> : vector<16x256xf32>
    %57 = tpu.matmul %55, %56, %cst_20 {dimension_numbers = #tpu.dot_dimension_numbers<[1], [0], [0], [1], [0, 0, 1, 1], [], []>} : vector<16x768xbf16>, vector<768x256xbf16>, vector<16x256xf32> -> vector<16x256xf32>
    %c0_21 = arith.constant 0 : index
    %c0_22 = arith.constant 0 : index
    %58 = vector.load %arg6[%c0_21, %c0_22] : memref<1x256xf32, #tpu.memory_space<vmem>>, vector<1x256xf32>
    %59 = vector.broadcast %58 : vector<1x256xf32> to vector<16x256xf32>
    %60 = arith.mulf %57, %59 : vector<16x256xf32>
    %c0_23 = arith.constant 0 : index
    %c0_24 = arith.constant 0 : index
    %61 = vector.load %arg7[%c0_23, %c0_24] : memref<1x256xf32, #tpu.memory_space<vmem>>, vector<1x256xf32>
    %62 = vector.broadcast %61 : vector<1x256xf32> to vector<16x256xf32>
    %63 = arith.addf %60, %62 : vector<16x256xf32>
    %c1_i32_25 = arith.constant 1 : i32
    %64 = tpu.dynamic_rotate %63 by %c1_i32_25 dim 0 : vector<16x256xf32>, i32 -> vector<16x256xf32>
    %cst_26 = arith.constant 0.000000e+00 : f32
    %65 = vector.shape_cast %18 : vector<16x1xi1> to vector<16x1xi1>
    %66 = vector.broadcast %65 : vector<16x1xi1> to vector<16x256xi1>
    %67 = vector.broadcast %cst_26 : f32 to vector<16x256xf32>
    %68 = arith.select %66, %67, %64 : vector<16x256xi1>, vector<16x256xf32>
    %c15_i32_27 = arith.constant 15 : i32
    %69 = tpu.dynamic_rotate %63 by %c15_i32_27 dim 0 : vector<16x256xf32>, i32 -> vector<16x256xf32>
    %cst_28 = arith.constant 0.000000e+00 : f32
    %70 = vector.shape_cast %36 : vector<16x1xi1> to vector<16x1xi1>
    %71 = vector.broadcast %70 : vector<16x1xi1> to vector<16x256xi1>
    %72 = vector.broadcast %cst_28 : f32 to vector<16x256xf32>
    %73 = arith.select %71, %72, %69 : vector<16x256xi1>, vector<16x256xf32>
    %74 = tpu.concatenate %68, %63, %73 in 1 : vector<16x256xf32>, vector<16x256xf32>, vector<16x256xf32> -> vector<16x768xf32>
    %75 = arith.truncf %74 : vector<16x768xf32> to vector<16x768xbf16>
    %c0_29 = arith.constant 0 : index
    %c0_30 = arith.constant 0 : index
    %76 = vector.load %arg3[%c0_29, %c0_30] : memref<768x128xbf16, #tpu.memory_space<vmem>>, vector<768x128xbf16>
    %cst_31 = arith.constant dense<0.000000e+00> : vector<16x128xf32>
    %77 = tpu.matmul %75, %76, %cst_31 {dimension_numbers = #tpu.dot_dimension_numbers<[1], [0], [0], [1], [0, 0, 1, 1], [], []>} : vector<16x768xbf16>, vector<768x128xbf16>, vector<16x128xf32> -> vector<16x128xf32>
    %c0_32 = arith.constant 0 : index
    %c0_33 = arith.constant 0 : index
    %78 = vector.load %arg8[%c0_32, %c0_33] : memref<1x128xf32, #tpu.memory_space<vmem>>, vector<1x128xf32>
    %79 = vector.broadcast %78 : vector<1x128xf32> to vector<16x128xf32>
    %80 = arith.mulf %77, %79 : vector<16x128xf32>
    %c0_34 = arith.constant 0 : index
    %c0_35 = arith.constant 0 : index
    %81 = vector.load %arg9[%c0_34, %c0_35] : memref<1x128xf32, #tpu.memory_space<vmem>>, vector<1x128xf32>
    %82 = vector.broadcast %81 : vector<1x128xf32> to vector<16x128xf32>
    %83 = arith.addf %80, %82 : vector<16x128xf32>
    %cst_36 = arith.constant 0.000000e+00 : f32
    %84 = vector.broadcast %cst_36 : f32 to vector<16x128xf32>
    %85 = arith.maximumf %83, %84 : vector<16x128xf32>
    %c0_37 = arith.constant 0 : index
    %c0_38 = arith.constant 0 : index
    %86 = vector.load %arg10[%c0_37, %c0_38] : memref<16x128xf32, #tpu.memory_space<vmem>>, vector<16x128xf32>
    tpu.vector_store %arg10[%c0_37, %c0_38], %85 {strides = array<i32>} : memref<16x128xf32, #tpu.memory_space<vmem>>, vector<16x128xf32>,
    return
  }
  func.func @transform_0(%arg0: i32) -> (i32, i32) {
    %c0_i32 = arith.constant 0 : i32
    %c0_i32_0 = arith.constant 0 : i32
    return %arg0, %c0_i32 : i32, i32
  }
  func.func @transform_1(%arg0: i32) -> (i32, i32) {
    %c0_i32 = arith.constant 0 : i32
    %c0_i32_0 = arith.constant 0 : i32
    %c0_i32_1 = arith.constant 0 : i32
    return %c0_i32, %c0_i32_0 : i32, i32
  }
  func.func @transform_2(%arg0: i32) -> (i32, i32) {
    %c0_i32 = arith.constant 0 : i32
    %c0_i32_0 = arith.constant 0 : i32
    %c0_i32_1 = arith.constant 0 : i32
    return %c0_i32, %c0_i32_0 : i32, i32
  }
  func.func @transform_3(%arg0: i32) -> (i32, i32) {
    %c0_i32 = arith.constant 0 : i32
    %c0_i32_0 = arith.constant 0 : i32
    %c0_i32_1 = arith.constant 0 : i32
    return %c0_i32, %c0_i32_0 : i32, i32
  }
  func.func @transform_4(%arg0: i32) -> (i32, i32) {
    %c0_i32 = arith.constant 0 : i32
    %c0_i32_0 = arith.constant 0 : i32
    %c0_i32_1 = arith.constant 0 : i32
    return %c0_i32, %c0_i32_0 : i32, i32
  }
  func.func @transform_5(%arg0: i32) -> (i32, i32) {
    %c0_i32 = arith.constant 0 : i32
    %c0_i32_0 = arith.constant 0 : i32
    %c0_i32_1 = arith.constant 0 : i32
    return %c0_i32, %c0_i32_0 : i32, i32
  }
  func.func @transform_6(%arg0: i32) -> (i32, i32) {
    %c0_i32 = arith.constant 0 : i32
    %c0_i32_0 = arith.constant 0 : i32
    %c0_i32_1 = arith.constant 0 : i32
    return %c0_i32, %c0_i32_0 : i32, i32
  }
  func.func @transform_7(%arg0: i32) -> (i32, i32) {
    %c0_i32 = arith.constant 0 : i32
    %c0_i32_0 = arith.constant 0 : i32
    %c0_i32_1 = arith.constant 0 : i32
    return %c0_i32, %c0_i32_0 : i32, i32
  }
  func.func @transform_8(%arg0: i32) -> (i32, i32) {
    %c0_i32 = arith.constant 0 : i32
    %c0_i32_0 = arith.constant 0 : i32
    %c0_i32_1 = arith.constant 0 : i32
    return %c0_i32, %c0_i32_0 : i32, i32
  }
  func.func @transform_9(%arg0: i32) -> (i32, i32) {
    %c0_i32 = arith.constant 0 : i32
    %c0_i32_0 = arith.constant 0 : i32
    return %arg0, %c0_i32 : i32, i32
  }
}

</mosaic_0001>

<bundles_post_ra>
// kernel: tpu_custom_call.1
= control target key start
LH: loop header
LB: loop body
LE: loop exit
PB: predicated region body
PF: predicated region fallthrough
CT: control target
= control target key end

     0   :  { %s2942_s0 = inlined_call_operand.hbm [shape: f32[32,256], index: 0, kind: input, shape index: {}]   ;;  %s2943_s1 = inlined_call_operand.hbm [shape: bf16[768,256], index: 1, kind: input, shape index: {}]   ;;  %s2944_s2 = inlined_call_operand.hbm [shape: bf16[768,128], index: 2, kind: input, shape index: {}]   ;;  %s2945_s3 = inlined_call_operand.vmem [shape: f32[1,256], index: 3, kind: input, shape index: {}]   ;;  %s2946_s4 = inlined_call_operand.vmem [shape: f32[1,256], index: 4, kind: input, shape index: {}]   ;;  %s2947_s5 = inlined_call_operand.vmem [shape: f32[1,256], index: 5, kind: input, shape index: {}]   ;;  %s2948_s6 = inlined_call_operand.vmem [shape: f32[1,256], index: 6, kind: input, shape index: {}]   ;;  %s2949_s7 = inlined_call_operand.vmem [shape: f32[1,128], index: 7, kind: input, shape index: {}]   ;;  %s2950_s8 = inlined_call_operand.vmem [shape: f32[1,128], index: 8, kind: input, shape index: {}]   ;;  %s2951_s9 = inlined_call_operand.hbm [shape: f32[32,128], index: 9, kind: output, shape index: {}]  }
   0x1   :  { %2956 = sst [smem:[#allocation13_spill]] %s2943_s1 }
   0x2   :  { %2957 = sst [smem:[#allocation14_spill]] %s2944_s2 }
   0x3   :  { %14 = vsyncpa [#allocation3], 0 }
   0x4   :  { %16 = vsyncpa [#allocation3 + $0x1], 0 }
   0x5   :  { %17 = vsyncpa [#allocation6], 0 }
   0x6   :  { %18 = vsyncpa [#allocation4], 0 }
   0x7   :  { %20 = vsyncpa [#allocation4 + $0x1], 0  ;;  %s2642_s30 = smov 0   ;;  %s2644_s10 = smov 0  }
   0x8   :  { %s2646_s11 = smov 0   ;;  %s2648_s12 = smov 0  }
   0x9 LB: > { %s2663_s13 = sadd.s32 4294967295, %s2577_s12   ;;  %s1893_s14 = sadd.s32 4294967294, %s2577_s12   ;;  %s2577_s12 = sphi %s2648_s12, %s2983_s12   ;;  %s2573_s11 = sphi %s2646_s11, %s2982_s11   ;;  %s2569_s10 = sphi %s2644_s10, %s2981_s10   ;;  %s2565_s30 = sphi %s2642_s30, %s2980_s30  }
   0xa   : > { %p46_p0 = scmp.ne.s32.totalorder %s2569_s10, %s2565_s30  ;;  %p2952_p1 = scmp.eq.s32.totalorder %s2663_s13, 0 }
   0xb   : > { %p244_p3 = scmp.eq.s32.totalorder %s1893_s14, 1  ;;  %p1894_p5 = scmp.ge.s32.totalorder %s2577_s12, 1 }
   0xc   : > { %p2672_p4 = por %p2952_p1, %p46_p0  ;;  %p251_p7 = scmp.lt.s32.totalorder %s2577_s12, 3 }
   0xd   : > { %p2677_p6 = por %p244_p3, %p46_p0  ;;  %s2579_s18 = smov [#allocation5]  }
   0xe   : > { %s2958_s15 = scalar_select %p2672_p4, 1, 0 }
   0xf   : > { %s2959_s16 = scalar_select %p2677_p6, 1, 0 }
  0x10   : > { %p2682_p8 = pnand %p1894_p5, %p251_p7  ;;  %s263_s19 = sshll.u32 %s2579_s18, 4  ;;  %s264_s19 = int_to_ptr.vmem [resolvable:$true] %s263_s19 }
  0x11   : > { %s2580_s21 = smov [#allocation7]   ;;  %s2440_s23 = scalar_lea.vmem %s264_s19, 12288 }
  0x12   : > { %s2960_s17 = scalar_select %p2682_p8, 1, 0 }
  0x13   : > { %p2173_p9 = pneg %p2682_p8  ;;  %s276_s22 = sshll.u32 %s2580_s21, 4  ;;  %s277_s22 = int_to_ptr.vmem [resolvable:$true] %s276_s22 }
  0x14   : > { %p2441_p13 = scmp.ne.s32.totalorder %s264_s19, %s2440_s23  ;;  %p2448_p5 = scmp.lt.s32.totalorder %s264_s19, %s264_s19 }
  0x15   : > { %p2691_p11 = pnand %p2173_p9, %p2952_p1  ;;  %p2449_p7 = scmp.lt.s32.totalorder %s2440_s23, %s2440_s23 }
  0x17   : > { %p2431_p12 = pneg %p2691_p11  ;;  %p2450_p10 = por %p2449_p7, %p2448_p5 }
  0x19   : > { %p2443_p0 = pnand %p2441_p13, %p2431_p12 }
  0x1b   : > { %p2444_p3 = pneg %p2443_p0 }
  0x1d   : > { %p2451_p9 = pnand %p2450_p10, %p2444_p3 }
  0x1f   : > { %2454 = shalt.err (!%p2451_p9)
}
  0x20   : > { %s2581_s24 = smov 128   ;;  %s2582_s25 = smov 8  }
  0x21   : > { %s2962_s1 = sld [smem:[#allocation13_spill]]  ;;  %s2466_s28 = scalar_lea.vmem %s277_s22, 6144 }
  0x22   : > { %p2467_p1 = scmp.ne.s32.totalorder %s277_s22, %s2466_s28  ;;  %p2474_p2 = scmp.lt.s32.totalorder %s277_s22, %s277_s22 }
  0x23   : > { %p2475_p6 = scmp.lt.s32.totalorder %s2466_s28, %s2466_s28 }
  0x24   : > { %p2469_p13 = pnand %p2467_p1, %p2431_p12 }
  0x25   : > { %p2476_p5 = por %p2475_p6, %p2474_p2 }
  0x26   : > { %p2470_p0 = pneg %p2469_p13 }
  0x27   : > { %2176 = dma.hbm_to_vmem [thread:$0]  (!%p2691_p11), %s2962_s1, 12288, %s264_s19, [#allocation6], %s2581_s24, %s2581_s24, %s2582_s25  }
  0x28   : > { %p2477_p10 = pnand %p2476_p5, %p2470_p0 }
  0x2a   : > { %2480 = shalt.err (!%p2477_p10)
}
  0x2b   : > { %s2583_s29 = smov 64   ;;  %s2584_s14 = smov 4  }
  0x2c   : > { %s2963_s2 = sld [smem:[#allocation14_spill]]  ;;  %s2714_s21 = sadd.s32 1, %s2577_s12  }
  0x2d   : > { %s30_s23 = ssub.s32 %s2577_s12, %s2714_s21  ;;  %s33_s24 = sadd.s32 1, %s2573_s11 }
  0x2e   : > { %p31_p1 = scmp.eq.s32.totalorder %s30_s23, 0  ;;  %p40_p2 = scmp.ne.s32.totalorder %s2573_s11, %s2569_s10 }
  0x2f   : > { %p41_p6 = scmp.eq.s32.totalorder %s2577_s12, 0  ;;  %p2965_p3 = scmp.eq.s32.totalorder %s2663_s13, 1 }
  0x30   : > { %s2723_s25 = scalar_select %p31_p1, %s2573_s11, %s33_s24  }
  0x31   : > { %p42_p12 = por %p41_p6, %p40_p2  ;;  %p2727_p7 = por %p2965_p3, %p40_p2 }
  0x32   : > { %2179 = dma.hbm_to_vmem [thread:$0]  (!%p2691_p11), %s2963_s2, 6144, %s277_s22, [#allocation6], %s2583_s29, %s2583_s29, %s2584_s14  }
  0x33   : > { %2964 = sst [smem:[#allocation12_spill]] %s2723_s25  ;;  %p2190_p9 = scmp.lt.s32.totalorder %s2577_s12, 2 }
  0x34   : > { %s2966_s26 = scalar_select %p2727_p7, 1, 0 }
  0x35   : > { %s308_s20 = sand.u32 1, %s2573_s11   ;;  %s2091_s22 = sshll.u32 %s2577_s12, 9 }
  0x36   : > { %s1898_s27 = sshll.u32 %s308_s20, 5  ;;  %s2737_s14 = scalar_lea.hbm %s2942_s0, %s2091_s22 }
  0x37   : > { %s312_s18 = scalar_lea.vmem [#allocation2], %s1898_s27  ;;  %p2741_p11 = pnand %p2190_p9, %p42_p12 }
  0x38   : > { %s320_s19 = sshll.u32 %s312_s18, 4  ;;  %s2745_s24 = scalar_lea.sflag [#allocation3], %s308_s20  ;;  %s2739_s19 = int_to_ptr.vmem [resolvable:$true] %s320_s19 }
  0x39   : > { %s2481_s1 = scalar_lea.hbm %s2737_s14, 512  ;;  %p2483_p0 = pneg %p2741_p11 }
  0x3a   : > { %p2482_p13 = scmp.ne.s32.totalorder %s2737_s14, %s2481_s1  ;;  %s2486_s27 = scalar_lea.hbm %s2942_s0, 1024 }
  0x3b   : > { %p2487_p1 = scmp.lt.s32.totalorder %s2737_s14, %s2942_s0  ;;  %p2488_p2 = scmp.lt.s32.totalorder %s2486_s27, %s2481_s1 }
  0x3c   : > { %p2484_p5 = pnand %p2483_p0, %p2482_p13 }
  0x3d   : > { %p2489_p6 = por %p2488_p2, %p2487_p1 }
  0x3e   : > { %p2485_p10 = pneg %p2484_p5 }
  0x40   : > { %p2490_p12 = pnand %p2489_p6, %p2485_p10 }
  0x42   : > { %2493 = shalt.err (!%p2490_p12)
}
  0x43   : > { %s2494_s20 = scalar_lea.vmem %s2739_s19, 512  ;;  %s2585_s2 = smov [#allocation2]  }
  0x44   : > { %p2495_p3 = scmp.ne.s32.totalorder %s2739_s19, %s2494_s20  ;;  %s2499_s25 = sshll.u32 %s2585_s2, 4  ;;  %s2500_s25 = int_to_ptr.vmem [resolvable:$false] %s2499_s25 }
  0x45   : > { %s2501_s22 = scalar_lea.vmem %s2500_s25, 1024  ;;  %p2502_p5 = scmp.lt.s32.totalorder %s2739_s19, %s2500_s25 }
  0x46   : > { %p2497_p9 = pnand %p2495_p3, %p2483_p0  ;;  %p2503_p7 = scmp.lt.s32.totalorder %s2501_s22, %s2494_s20 }
  0x48   : > { %p2498_p13 = pneg %p2497_p9  ;;  %p2504_p4 = por %p2503_p7, %p2502_p5 }
  0x4a   : > { %p2505_p8 = pnand %p2504_p4, %p2498_p13 }
  0x4c   : > { %2508 = shalt.err (!%p2505_p8)
}
  0x4d   : > { %s2586_s1 = smov 256   ;;  %s2587_s28 = smov 16  }
  0x4e   : > { %2183 = dma.hbm_to_vmem [thread:$0]  (!%p2741_p11), %s2737_s14, 512, %s2739_s19, %s2745_s24, %s2586_s1, %s2586_s1, %s2587_s28  }
  0x4f   : > { %p2968_p0 = scmp.ne.s32.totalorder %s2960_s17, 0 }
  0x50   : > { %s2769_s2 = sand.u32 (!%p2968_p0), 1, %s2569_s10   ;;  %p2969_p4 = scmp.ne.s32.totalorder (!%p2968_p0), %s2958_s15, 0 }
  0x51   : > { %332 = sbr.rel (%p2968_p0) target bundleno = 687 (0x2af), region = 56  ;;  %s1903_s25 = sshll.u32 (!%p2968_p0), %s2769_s2, 5 }
  0x52   : > { %s335_s27 = scalar_lea.sflag (!%p2968_p0), [#allocation3], %s2769_s2  ;;  %s2773_s29 = scalar_lea.vmem (!%p2968_p0), [#allocation2], %s1903_s25 }
  0x56   : > { %2552 = dma.done.wait (%p2969_p4), %s335_s27, 512  }
  0x57   : > { %2554 = vsyncadd (%p2969_p4), %s335_s27, 4294966784  ;;  %p2970_p8 = scmp.eq.s32.totalorder %s2663_s13, 0 }
  0x59   : > { %2556 = dma.done.wait (%p2970_p8), [#allocation6], 18432   ;;  %p2971_p7 = pmov %p2970_p8 }
  0x5a   : > { %v2237_v0 = vld [vmem:[#allocation5 + $0x74] ss:$8 sps:$4 sm:$0xff]   ;;  %v2241_v2 = vld [vmem:[#allocation5 + $0x70] ss:$8 sps:$4 sm:$0xff]   ;;  %v2243_v4 = vld [vmem:[#allocation5 + $0x64] ss:$8 sps:$4 sm:$0xff]   ;;  %v384_v37 = vlaneseq }
  0x5b   : > { %2558 = vsyncadd (%p2971_p7), [#allocation6], 4294948864  ;;  %v2239_v1 = vld [vmem:[#allocation5 + $0x174] ss:$8 sps:$4 sm:$0xff]   ;;  %1067 = vmatprep.subr.bf16.mxu0 %v2237_v0  ;;  %v2242_v3 = vld [vmem:[#allocation5 + $0x170] ss:$8 sps:$4 sm:$0xff]  }
  0x5c   : > { %1110 = vmatprep.subr.bf16.mxu1 %v2239_v1  ;;  %1068 = vmatpush1.bf16.msra.mxu0 %v2241_v2  ;;  %v2245_v5 = vld [vmem:[#allocation5 + $0x164] ss:$8 sps:$4 sm:$0xff]   ;;  %v2247_v6 = vld [vmem:[#allocation5 + $0x60] ss:$8 sps:$4 sm:$0xff]   ;;  %v2249_v8 = vld [vmem:[#allocation5 + $0x54] ss:$8 sps:$4 sm:$0xff]  }
  0x5d   : > { %1111 = vmatpush1.bf16.msra.mxu1 %v2242_v3  ;;  %1069 = vmatprep.subr.bf16.mxu0 %v2243_v4  ;;  %v2248_v7 = vld [vmem:[#allocation5 + $0x160] ss:$8 sps:$4 sm:$0xff]   ;;  %v2251_v9 = vld [vmem:[#allocation5 + $0x154] ss:$8 sps:$4 sm:$0xff]   ;;  %v2253_v10 = vld [vmem:[#allocation5 + $0x50] ss:$8 sps:$4 sm:$0xff]  }
  0x5e   : > { %1112 = vmatprep.subr.bf16.mxu1 %v2245_v5  ;;  %v2254_v11 = vld [vmem:[#allocation5 + $0x150] ss:$8 sps:$4 sm:$0xff]   ;;  %v2255_v12 = vld [vmem:[#allocation5 + $0x44] ss:$8 sps:$4 sm:$0xff]   ;;  %v2259_v14 = vld [vmem:[#allocation5 + $0x40] ss:$8 sps:$4 sm:$0xff]  }
  0x5f   : > { %v2257_v13 = vld [vmem:[#allocation5 + $0x144] ss:$8 sps:$4 sm:$0xff]   ;;  %v2260_v15 = vld [vmem:[#allocation5 + $0x140] ss:$8 sps:$4 sm:$0xff]   ;;  %v2261_v16 = vld [vmem:[#allocation5 + $0x34] ss:$8 sps:$4 sm:$0xff]  }
  0x60   : > { %1070 = vmatpush1.bf16.msra.mxu0 %v2247_v6  ;;  %v2263_v17 = vld [vmem:[#allocation5 + $0x134] ss:$8 sps:$4 sm:$0xff]   ;;  %v2265_v18 = vld [vmem:[#allocation5 + $0x30] ss:$8 sps:$4 sm:$0xff]   ;;  %v2267_v20 = vld [vmem:[#allocation5 + $0x24] ss:$8 sps:$4 sm:$0xff]  }
  0x61   : > { %1113 = vmatpush1.bf16.msra.mxu1 %v2248_v7  ;;  %1071 = vmatprep.subr.bf16.mxu0 %v2249_v8  ;;  %v2266_v19 = vld [vmem:[#allocation5 + $0x130] ss:$8 sps:$4 sm:$0xff]   ;;  %v2269_v21 = vld [vmem:[#allocation5 + $0x124] ss:$8 sps:$4 sm:$0xff]   ;;  %v2271_v22 = vld [vmem:[#allocation5 + $0x20] ss:$8 sps:$4 sm:$0xff]  }
  0x62   : > { %1114 = vmatprep.subr.bf16.mxu1 %v2251_v9  ;;  %v2272_v23 = vld [vmem:[#allocation5 + $0x120] ss:$8 sps:$4 sm:$0xff]   ;;  %v2273_v24 = vld [vmem:[#allocation5 + $0x14] ss:$8 sps:$4 sm:$0xff]   ;;  %v2277_v26 = vld [vmem:[#allocation5 + $0x10] ss:$8 sps:$4 sm:$0xff]  }
  0x63   : > { %v2275_v25 = vld [vmem:[#allocation5 + $0x114] ss:$8 sps:$4 sm:$0xff]   ;;  %v2278_v27 = vld [vmem:[#allocation5 + $0x110] ss:$8 sps:$4 sm:$0xff]   ;;  %v2279_v28 = vld [vmem:[#allocation5 + $0x4] ss:$8 sps:$4 sm:$0xff]  }
  0x64   : > { %1072 = vmatpush1.bf16.msra.mxu0 %v2253_v10  ;;  %v2281_v29 = vld [vmem:[#allocation5 + $0x104] ss:$8 sps:$4 sm:$0xff]   ;;  %v2283_v30 = vld [vmem:[#allocation5] ss:$8 sps:$4 sm:$0xff]   ;;  %v2285_v32 = vld [vmem:[#allocation5 + $0xf4] ss:$8 sps:$4 sm:$0xff]  }
  0x65   : > { %1115 = vmatpush1.bf16.msra.mxu1 %v2254_v11  ;;  %1073 = vmatprep.subr.bf16.mxu0 %v2255_v12  ;;  %v2284_v31 = vld [vmem:[#allocation5 + $0x100] ss:$8 sps:$4 sm:$0xff]   ;;  %v2287_v33 = vld [vmem:[#allocation5 + $0x1f4] ss:$8 sps:$4 sm:$0xff]   ;;  %v2289_v34 = vld [vmem:[#allocation5 + $0xf0] ss:$8 sps:$4 sm:$0xff]  }
  0x66   : > { %1116 = vmatprep.subr.bf16.mxu1 %v2257_v13  ;;  %v2290_v35 = vld [vmem:[#allocation5 + $0x1f0] ss:$8 sps:$4 sm:$0xff]   ;;  %v2291_v36 = vld [vmem:[#allocation5 + $0xe4] ss:$8 sps:$4 sm:$0xff]   ;;  %v2295_v39 = vld [vmem:[#allocation5 + $0xe0] ss:$8 sps:$4 sm:$0xff]  }
  0x67   : > { %v2293_v38 = vld [vmem:[#allocation5 + $0x1e4] ss:$8 sps:$4 sm:$0xff]   ;;  %v2296_v40 = vld [vmem:[#allocation5 + $0x1e0] ss:$8 sps:$4 sm:$0xff]   ;;  %v2297_v41 = vld [vmem:[#allocation5 + $0xd4] ss:$8 sps:$4 sm:$0xff]  }
  0x68   : > { %1074 = vmatpush1.bf16.msra.mxu0 %v2259_v14  ;;  %v2783_v42 = vshrl.u32 %v384_v37, 7  ;;  %v2299_v43 = vld [vmem:[#allocation5 + $0x1d4] ss:$8 sps:$4 sm:$0xff]   ;;  %v2301_v44 = vld [vmem:[#allocation5 + $0xd0] ss:$8 sps:$4 sm:$0xff]   ;;  %v416_v52 = vld [vmem:[%s2773_s29 + $0x8] sm:$0xff] }
  0x69   : > { %1117 = vmatpush1.bf16.msra.mxu1 %v2260_v15  ;;  %1075 = vmatprep.subr.bf16.mxu0 %v2261_v16  ;;  %v2302_v45 = vld [vmem:[#allocation5 + $0x1d0] ss:$8 sps:$4 sm:$0xff]   ;;  %v2303_v46 = vld [vmem:[#allocation5 + $0xc4] ss:$8 sps:$4 sm:$0xff]   ;;  %v2307_v50 = vld [vmem:[#allocation5 + $0xc0] ss:$8 sps:$4 sm:$0xff]  }
  0x6a   : > { %1118 = vmatprep.subr.bf16.mxu1 %v2263_v17  ;;  %v2786_v47 = vsub.s32 0, %v2783_v42  ;;  %v2789_v48 = vsub.s32 1, %v2783_v42  ;;  %v2305_v49 = vld [vmem:[#allocation5 + $0x1c4] ss:$8 sps:$4 sm:$0xff]   ;;  %v2308_v51 = vld [vmem:[#allocation5 + $0x1c0] ss:$8 sps:$4 sm:$0xff]  }
  0x6b   : > { %v418_v53 = vld [vmem:[%s2773_s29 + $0x18] sm:$0xff]  ;;  %v419_v54 = vld [vmem:[%s2945_s3] sm:$0x3]  ;;  %v391_v61 = vand.u32 15, %v2783_v42  ;;  %v417_v63 = vld [vmem:[%s2773_s29 + $0x10] sm:$0xff]  ;;  %vm455_vm0 = vcmp.lt.s32.totalorder %v2783_v42, 1 }
  0x6c   : > { %1076 = vmatpush1.bf16.msra.mxu0 %v2265_v18  ;;  %v435_v55 = vld [vmem:[%s2946_s4] sm:$0x3]  ;;  %v2309_v56 = vld [vmem:[#allocation5 + $0xb4] ss:$8 sps:$4 sm:$0xff]   ;;  %v424_v58 = vrot.slane %v419_v54, %v2786_v47  ;;  %v428_v59 = vrot.slane %v419_v54, %v2789_v48  ;;  %v2313_v2 = vld [vmem:[#allocation5 + $0xb0] ss:$8 sps:$4 sm:$0xff]  }
  0x6d   : > { %1119 = vmatpush1.bf16.msra.mxu1 %v2266_v19  ;;  %1077 = vmatprep.subr.bf16.mxu0 %v2267_v20  ;;  %v2311_v57 = vld [vmem:[#allocation5 + $0x1b4] ss:$8 sps:$4 sm:$0xff]   ;;  %v415_v60 = vld [vmem:[%s2773_s29] sm:$0xff]  ;;  %v444_v62 = vrot.slane %v435_v55, %v2789_v48  ;;  %v440_v3 = vrot.slane %v435_v55, %v2786_v47  ;;  %v2314_v5 = vld [vmem:[#allocation5 + $0x1b0] ss:$8 sps:$4 sm:$0xff]   ;;  %vm2093_vm1 = vcmp.ne.s32.totalorder %v391_v61, 0 }
  0x6e   : > { %1120 = vmatprep.subr.bf16.mxu1 %v2269_v21  ;;  %v432_v0 = vmul.f32 %v428_v59, %v416_v52  ;;  %v434_v1 = vmul.f32 %v428_v59, %v418_v53  ;;  %v431_v4 = vmul.f32 %v424_v58, %v415_v60  ;;  %v2315_v6 = vld [vmem:[#allocation5 + $0xa4] ss:$8 sps:$4 sm:$0xff]   ;;  %v433_v9 = vmul.f32 %v424_v58, %v417_v63  ;;  %v2319_v11 = vld [vmem:[#allocation5 + $0xa0] ss:$8 sps:$4 sm:$0xff]   ;;  %v2321_v16 = vld [vmem:[#allocation5 + $0x94] ss:$8 sps:$4 sm:$0xff]  }
  0x6f   : > { %v2317_v10 = vld [vmem:[#allocation5 + $0x1a4] ss:$8 sps:$4 sm:$0xff]   ;;  %v2320_v15 = vld [vmem:[#allocation5 + $0x1a0] ss:$8 sps:$4 sm:$0xff]   ;;  %vm2588_vm2 = vmmov 1   ;;  %vm472_vm4 = vcmp.lt.s32.totalorder %v2783_v42, 7 }
  0x70   : > { %1078 = vmatpush1.bf16.msra.mxu0 %v2271_v22  ;;  %v448_v7 = vadd.f32 %v444_v62, %v432_v0  ;;  %v450_v8 = vadd.f32 %v444_v62, %v434_v1  ;;  %v447_v17 = vadd.f32 %v440_v3, %v431_v4  ;;  %vm2812_vm3 = vmpackc.low %vm2588_vm2, %vm2093_vm1  ;;  %v449_v21 = vadd.f32 %v440_v3, %v433_v9  ;;  %v2323_v22 = vld [vmem:[#allocation5 + $0x194] ss:$8 sps:$4 sm:$0xff]   ;;  %v2338_v52 = vld [vmem:[#allocation5 + $0x264] ss:$8 sps:$4 sm:$0xff]   ;;  %s1906_s27 = sshll.u32 %s2769_s2, 4  ;;  %s2092_s29 = sshll.u32 %s2663_s13, 8 }
  0x71   : > { %1121 = vmatpush1.bf16.msra.mxu1 %v2272_v23  ;;  %1079 = vmatprep.subr.bf16.mxu0 %v2273_v24  ;;  %v2336_v55 = vld [vmem:[#allocation5 + $0x260] ss:$8 sps:$4 sm:$0xff]   ;;  %v2344_v58 = vld [vmem:[#allocation5 + $0x244] ss:$8 sps:$4 sm:$0xff]   ;;  %v2347_v60 = vld [vmem:[#allocation5 + $0x234] ss:$8 sps:$4 sm:$0xff]   ;;  %s2897_s23 = scalar_lea.hbm %s2951_s9, %s2092_s29 }
  0x72   : > { %1122 = vmatprep.subr.bf16.mxu1 %v2275_v25  ;;  %v452_v12 = vrot.slane %v448_v7, 7  ;;  %v454_v13 = vrot.slane %v450_v8, 7  ;;  %v488_v14 = vpack.c.bf16 %v450_v8, %v448_v7  ;;  %v468_v24 = vrot.slane %v447_v17, 1  ;;  %v2342_v59 = vld [vmem:[#allocation5 + $0x240] ss:$8 sps:$4 sm:$0xff]   ;;  %v2423_v20 = vld [vmem:[#allocation7 + $0xd0] sm:$0xff]  }
  0x73   : > { %v386_v25 = vadd.s32 8, %v2783_v42  ;;  %v2345_v61 = vld [vmem:[#allocation5 + $0x230] ss:$8 sps:$4 sm:$0xff]   ;;  %v2350_v62 = vld [vmem:[#allocation5 + $0x224] ss:$8 sps:$4 sm:$0xff]   ;;  %s380_s15 = scalar_lea.vmem [#allocation8], %s1906_s27 }
  0x74   : > { %1080 = vmatpush1.bf16.msra.mxu0 %v2277_v26  ;;  %v457_v18 = vsel %vm455_vm0, %v452_v12, %v454_v13  ;;  %v459_v19 = vsel %vm455_vm0, %v454_v13, %v452_v12  ;;  %1142 = vmatprep.mubr.bf16.mxu1 %v488_v14  ;;  %v470_v26 = vrot.slane %v449_v21, 1  ;;  %v2348_v63 = vld [vmem:[#allocation5 + $0x220] ss:$8 sps:$4 sm:$0xff]   ;;  %v2353_v0 = vld [vmem:[#allocation5 + $0x214] ss:$8 sps:$4 sm:$0xff]   ;;  %s1801_s17 = sshll.u32 %s380_s15, 4  ;;  %s2899_s17 = int_to_ptr.vmem [resolvable:$true] %s1801_s17 }
  0x75   : > { %1123 = vmatpush1.bf16.msra.mxu1 %v2278_v27  ;;  %1081 = vmatprep.subr.bf16.mxu0 %v2279_v28  ;;  %v2005_v23 = vpack.c.bf16 %v457_v18, %v459_v19  ;;  %v2325_v27 = vld [vmem:[#allocation5 + $0x90] ss:$8 sps:$4 sm:$0xff]   ;;  %v2354_v3 = vld [vmem:[#allocation5 + $0x200] ss:$8 sps:$4 sm:$0xff]   ;;  %v2359_v4 = vld [vmem:[#allocation5 + $0x2f4] ss:$8 sps:$4 sm:$0xff]  }
  0x76   : > { %1124 = vmatprep.subr.bf16.mxu1 %v2281_v29  ;;  %v2326_v28 = vld [vmem:[#allocation5 + $0x190] ss:$8 sps:$4 sm:$0xff]   ;;  %v2327_v29 = vld [vmem:[#allocation5 + $0x84] ss:$8 sps:$4 sm:$0xff]   ;;  %v2371_v12 = vld [vmem:[#allocation5 + $0x2b4] ss:$8 sps:$4 sm:$0xff]  }
  0x77   : > { %2006 = vmatprep.mubr.msk.bf16.mxu0 %vm2812_vm3, %v2005_v23  ;;  %v2351_v1 = vld [vmem:[#allocation5 + $0x210] ss:$8 sps:$4 sm:$0xff]   ;;  %v2374_v14 = vld [vmem:[#allocation5 + $0x2a4] ss:$8 sps:$4 sm:$0xff]   ;;  %v2378_v19 = vld [vmem:[#allocation5 + $0x280] ss:$8 sps:$4 sm:$0xff]  }
  0x78   : > { %1082 = vmatpush1.bf16.msra.mxu0 %v2283_v30  ;;  %v451_v30 = vrot.slane %v447_v17, 7  ;;  %v2363_v9 = vld [vmem:[#allocation5 + $0x2d0] ss:$8 sps:$4 sm:$0xff]   ;;  %v2380_v18 = vld [vmem:[#allocation5 + $0x284] ss:$8 sps:$4 sm:$0xff]   ;;  %s1788_s24 = scalar_lea.sflag [#allocation4], %s2769_s2 }
  0x79   : > { %1125 = vmatpush1.bf16.msra.mxu1 %v2284_v31  ;;  %1083 = vmatprep.subr.bf16.mxu0 %v2285_v32  ;;  %v453_v31 = vrot.slane %v449_v21, 7  ;;  %v2822_v32 = vsel %vm472_vm4, %v468_v24, %v470_v26  ;;  %v2369_v13 = vld [vmem:[#allocation5 + $0x2b0] ss:$8 sps:$4 sm:$0xff]   ;;  %s2509_s18 = scalar_lea.vmem %s2899_s17, 256  ;;  %p2976_p10 = scmp.ne.s32.totalorder %s2966_s26, 0 }
  0x7a   : > { %1126 = vmatprep.subr.bf16.mxu1 %v2287_v33  ;;  %v2826_v33 = vsel %vm472_vm4, %v470_v26, %v468_v24  ;;  %v2383_v23 = vld [vmem:[#allocation7 + $0x178] sm:$0xff]   ;;  %v2387_v26 = vld [vmem:[#allocation7 + $0x170] sm:$0xff]   ;;  %p2510_p11 = scmp.ne.s32.totalorder %s2899_s17, %s2509_s18  ;;  %s2589_s13 = smov [#allocation8]  }
  0x7b   : > { %v2017_v37 = vpack.c.bf16 %v2826_v33, %v2822_v32  ;;  %v2384_v24 = vld [vmem:[#allocation7 + $0x138] sm:$0xff]   ;;  %v2392_v32 = vld [vmem:[#allocation7 + $0x128] sm:$0xff]   ;;  %v2393_v33 = vld [vmem:[#allocation7 + $0x60] sm:$0xff]   ;;  %s2513_s20 = sshll.u32 %s2589_s13, 4  ;;  %s2514_s20 = int_to_ptr.vmem [resolvable:$false] %s2513_s20 }
  0x7c   : > { %1084 = vmatpush2.bf16.msra.mxu0 %v2289_v34  ;;  %v2329_v34 = vld [vmem:[#allocation5 + $0x184] ss:$8 sps:$4 sm:$0xff]   ;;  %v2416_v42 = vld [vmem:[#allocation7 + $0xb0] sm:$0xff]   ;;  %p2511_p1 = pnand %p2510_p11, %p2976_p10  ;;  %s2515_s22 = scalar_lea.vmem %s2514_s20, 512 }
  0x7d   : > { %1127 = vmatpush2.bf16.msra.mxu1 %v2290_v35  ;;  %1085 = vmatprep.subr.bf16.mxu0 %v2291_v36  ;;  %v469_v35 = vrot.slane %v448_v7, 1  ;;  %v471_v36 = vrot.slane %v450_v8, 1  ;;  %v2360_v7 = vld [vmem:[#allocation5 + $0x2e0] ss:$8 sps:$4 sm:$0xff]   ;;  %v2365_v8 = vld [vmem:[#allocation5 + $0x2d4] ss:$8 sps:$4 sm:$0xff]   ;;  %p2516_p6 = scmp.lt.s32.totalorder %s2899_s17, %s2514_s20  ;;  %p2517_p12 = scmp.lt.s32.totalorder %s2515_s22, %s2509_s18 }
  0x7e   : > { %1128 = vmatprep.subr.bf16.mxu1 %v2293_v38  ;;  %v398_v38 = vand.u32 15, %v386_v25  ;;  %v2385_v25 = vld [vmem:[#allocation7 + $0x70] sm:$0xff]   ;;  %p2512_p2 = pneg %p2511_p1 }
  0x7f   : > { %v2424_v54 = vld [vmem:[#allocation7 + $0x90] sm:$0xff]   ;;  %p2518_p3 = por %p2517_p12, %p2516_p6 }
  0x80   : > { %1086 = vmatpush2.bf16.msra.mxu0 %v2295_v39  ;;  %v2331_v39 = vld [vmem:[#allocation5 + $0x80] ss:$8 sps:$4 sm:$0xff]   ;;  %vm2094_vm5 = vcmp.ne.s32.totalorder %v398_v38, 15  ;;  %v2398_v38 = vld [vmem:[#allocation7 + $0x18] sm:$0xff]  }
  0x81   : > { %1129 = vmatpush2.bf16.msra.mxu1 %v2296_v40  ;;  %1087 = vmatprep.subr.bf16.mxu0 %v2297_v41  ;;  %v2332_v40 = vld [vmem:[#allocation5 + $0x180] ss:$8 sps:$4 sm:$0xff]   ;;  %v456_v41 = vsel %vm455_vm0, %v451_v30, %v453_v31  ;;  %vm2839_vm6 = vmpackc.low %vm2094_vm5, %vm2588_vm2  ;;  %p2519_p9 = pnand %p2518_p3, %p2512_p2 }
  0x82   : > { %1130 = vmatprep.subr.bf16.mxu1 %v2299_v43  ;;  %v458_v43 = vsel %vm455_vm0, %v453_v31, %v451_v30  ;;  %v2391_v30 = vld [vmem:[#allocation7 + $0x168] sm:$0xff]  }
  0x83   : > { %v2390_v31 = vld [vmem:[#allocation7 + $0x28] sm:$0xff]  }
  0x84   : > { %1088 = vmatpush2.bf16.msra.mxu0 %v2301_v44  ;;  %v2335_v44 = vld [vmem:[#allocation5 + $0x274] ss:$8 sps:$4 sm:$0xff]  }
  0x85   : > { %1131 = vmatpush2.bf16.msra.mxu1 %v2302_v45  ;;  %1089 = vmatprep.subr.bf16.mxu0 %v2303_v46  ;;  %v474_v45 = vsel %vm472_vm4, %v469_v35, %v471_v36  ;;  %v476_v46 = vsel %vm472_vm4, %v471_v36, %v469_v35  ;;  %v2394_v35 = vld [vmem:[#allocation7 + $0x20] sm:$0xff]  }
  0x86   : > { %1132 = vmatprep.subr.bf16.mxu1 %v2305_v49  ;;  %v2009_v49 = vpack.c.bf16 %v456_v41, %v458_v43  ;;  %v2013_v53 = vpack.c.bf16 %v476_v46, %v474_v45  ;;  %v2396_v36 = vld [vmem:[#allocation7 + $0x120] sm:$0xff]   ;;  %v2401_v41 = vld [vmem:[#allocation7 + $0x50] sm:$0xff]   ;;  %v2405_v46 = vld [vmem:[#allocation7 + $0x48] sm:$0xff]  }
  0x87   : > { %v2402_v43 = vld [vmem:[#allocation7 + $0x10] sm:$0xff]  }
  0x88   : > { %1090 = vmatpush2.bf16.msra.mxu0 %v2307_v50  ;;  %v487_v50 = vpack.c.bf16 %v449_v21, %v447_v17  ;;  %v2375_v17 = vld [vmem:[#allocation5 + $0x290] ss:$8 sps:$4 sm:$0xff]  }
  0x89   : > { %1133 = vmatpush2.bf16.msra.mxu1 %v2308_v51  ;;  %1091 = vmatprep.subr.bf16.mxu0 %v2309_v56  ;;  %v2333_v51 = vld [vmem:[#allocation5 + $0x270] ss:$8 sps:$4 sm:$0xff]   ;;  %v2341_v56 = vld [vmem:[#allocation5 + $0x254] ss:$8 sps:$4 sm:$0xff]  }
  0x8a   : > { %1134 = vmatprep.subr.bf16.mxu1 %v2311_v57  ;;  %v2339_v57 = vld [vmem:[#allocation5 + $0x250] ss:$8 sps:$4 sm:$0xff]  }
  0x8b   : > { %v2381_v21 = vld [vmem:[#allocation7 + $0x78] sm:$0xff]   ;;  %v2404_v45 = vld [vmem:[#allocation7 + $0x110] sm:$0xff]  }
  0x8c   : > { %1092 = vmatpush2.bf16.msra.mxu0 %v2313_v2  ;;  %v2356_v2 = vld [vmem:[#allocation5 + $0x204] ss:$8 sps:$4 sm:$0xff]  }
  0x8d   : > { %1135 = vmatpush2.bf16.msra.mxu1 %v2314_v5  ;;  %1093 = vmatprep.subr.bf16.mxu0 %v2315_v6  ;;  %v2357_v5 = vld [vmem:[#allocation5 + $0x2f0] ss:$8 sps:$4 sm:$0xff]   ;;  %v2362_v6 = vld [vmem:[#allocation5 + $0x2e4] ss:$8 sps:$4 sm:$0xff]  }
  0x8e   : > { %1136 = vmatprep.subr.bf16.mxu1 %v2317_v10  ;;  %v2368_v10 = vld [vmem:[#allocation5 + $0x2c4] ss:$8 sps:$4 sm:$0xff]  }
  0x90   : > { %1094 = vmatpush2.bf16.msra.mxu0 %v2319_v11  ;;  %v2366_v11 = vld [vmem:[#allocation5 + $0x2c0] ss:$8 sps:$4 sm:$0xff]  }
  0x91   : > { %1137 = vmatpush2.bf16.msra.mxu1 %v2320_v15  ;;  %1095 = vmatprep.subr.bf16.mxu0 %v2321_v16  ;;  %v2372_v15 = vld [vmem:[#allocation5 + $0x2a0] ss:$8 sps:$4 sm:$0xff]   ;;  %v2377_v16 = vld [vmem:[#allocation5 + $0x294] ss:$8 sps:$4 sm:$0xff]  }
  0x92   : > { %1138 = vmatprep.subr.bf16.mxu1 %v2323_v22  ;;  %v2382_v22 = vld [vmem:[#allocation7 + $0x38] sm:$0xff]  }
  0x94   : > { %1096 = vmatpush2.bf16.msra.mxu0 %v2325_v27  ;;  %v2386_v27 = vld [vmem:[#allocation7 + $0x30] sm:$0xff]  }
  0x95   : > { %1139 = vmatpush2.bf16.msra.mxu1 %v2326_v28  ;;  %1097 = vmatprep.subr.bf16.mxu0 %v2327_v29  ;;  %v2388_v28 = vld [vmem:[#allocation7 + $0x130] sm:$0xff]   ;;  %v2389_v29 = vld [vmem:[#allocation7 + $0x68] sm:$0xff]  }
  0x96   : > { %1140 = vmatprep.subr.bf16.mxu1 %v2329_v34  ;;  %v2395_v34 = vld [vmem:[#allocation7 + $0x160] sm:$0xff]  }
  0x98   : > { %1098 = vmatpush2.bf16.msra.mxu0 %v2331_v39  ;;  %v2399_v39 = vld [vmem:[#allocation7 + $0x158] sm:$0xff]  }
  0x99   : > { %1141 = vmatpush2.bf16.msra.mxu1 %v2332_v40  ;;  %1153 = vmatprep.subr.bf16.mxu0 %v2335_v44  ;;  %v2400_v40 = vld [vmem:[#allocation7 + $0x118] sm:$0xff]   ;;  %v2403_v44 = vld [vmem:[#allocation7 + $0x150] sm:$0xff]  }
  0x9a   : > { %2095 = vmatprep.subr.bf16.mxu1 %v2381_v21 }
  0x9b   : > { %2010 = vmatmul.mubr.msk.bf16.vlgmr.msra.gmra.mxu0 %vm2812_vm3, %v2009_v49  ;;  %v2406_v49 = vld [vmem:[#allocation7 + $0x8] sm:$0xff]  }
  0x9c   : > { %1143 = vmatmul.mubr.bf16.vlgmr.msra.gmra.mxu1 %v487_v50  ;;  %1154 = vmatpush1.bf16.msra.mxu0 %v2333_v51  ;;  %v2407_v50 = vld [vmem:[#allocation7 + $0x148] sm:$0xff]  }
  0x9d   : > { %2014 = vmatprep.mubr.msk.bf16.mxu0 %vm2839_vm6, %v2013_v53  ;;  %1155 = vmatprep.subr.bf16.mxu0 %v2338_v52  ;;  %v2408_v51 = vld [vmem:[#allocation7 + $0x108] sm:$0xff]   ;;  %v2409_v52 = vld [vmem:[#allocation7 + $0x40] sm:$0xff]  }
  0x9e   : > { %2096 = vmatpush3.bf16.msra.mxu1 %v2382_v22  ;;  %v2410_v53 = vld [vmem:[#allocation7] sm:$0xff]  }
  0x9f   : > { %2097 = vmatprep.subr.bf16.mxu1 %v2385_v25 }
  0xa0   : > { %1156 = vmatpush1.bf16.msra.mxu0 %v2336_v55  ;;  %v2411_v55 = vld [vmem:[#allocation7 + $0x140] sm:$0xff]  }
  0xa1   : > { %1157 = vmatprep.subr.bf16.mxu0 %v2341_v56  ;;  %v2412_v56 = vld [vmem:[#allocation7 + $0x100] sm:$0xff]  }
  0xa2   : > { %2098 = vmatpush3.bf16.msra.mxu1 %v2386_v27 }
  0xa3   : > { %2099 = vmatprep.subr.bf16.mxu1 %v2389_v29 }
  0xa4   : > { %1158 = vmatpush1.bf16.msra.mxu0 %v2339_v57  ;;  %v2413_v57 = vld [vmem:[#allocation7 + $0xf8] sm:$0xff]  }
  0xa5   : > { %1159 = vmatprep.subr.bf16.mxu0 %v2344_v58 }
  0xa6   : > { %2100 = vmatpush3.bf16.msra.mxu1 %v2390_v31 }
  0xa7   : > { %2101 = vmatprep.subr.bf16.mxu1 %v2393_v33 }
  0xa8   : > { %1160 = vmatpush1.bf16.msra.mxu0 %v2342_v59 }
  0xa9   : > { %1161 = vmatprep.subr.bf16.mxu0 %v2347_v60 }
  0xaa   : > { %2102 = vmatpush3.bf16.msra.mxu1 %v2394_v35 }
  0xac   : > { %1162 = vmatpush1.bf16.msra.mxu0 %v2345_v61 }
  0xad   : > { %1163 = vmatprep.subr.bf16.mxu0 %v2350_v62 }
  0xb0   : > { %1164 = vmatpush1.bf16.msra.mxu0 %v2348_v63 }
  0xb1   : > { %1165 = vmatprep.subr.bf16.mxu0 %v2353_v0  ;;  %v1196_v0 = vld [vmem:[%s2947_s5] sm:$0x3] }
  0xb4   : > { %1166 = vmatpush1.bf16.msra.mxu0 %v2351_v1 }
  0xb5   : > { %1167 = vmatprep.subr.bf16.mxu0 %v2356_v2 }
  0xb8   : > { %1168 = vmatpush1.bf16.msra.mxu0 %v2354_v3 }
  0xb9   : > { %1169 = vmatprep.subr.bf16.mxu0 %v2359_v4 }
  0xbc   : > { %1170 = vmatpush2.bf16.msra.mxu0 %v2357_v5 }
  0xbd   : > { %1171 = vmatprep.subr.bf16.mxu0 %v2362_v6  ;;  %v1201_v6 = vrot.slane %v1196_v0, %v2786_v47 }
  0xc0   : > { %1172 = vmatpush2.bf16.msra.mxu0 %v2360_v7  ;;  %v1212_v7 = vld [vmem:[%s2948_s6] sm:$0x3] }
  0xc1   : > { %1173 = vmatprep.subr.bf16.mxu0 %v2365_v8 }
  0xc4   : > { %1174 = vmatpush2.bf16.msra.mxu0 %v2363_v9  ;;  %v1205_v9 = vrot.slane %v1196_v0, %v2789_v48 }
  0xc5   : > { %1175 = vmatprep.subr.bf16.mxu0 %v2368_v10 }
  0xc8   : > { %1176 = vmatpush2.bf16.msra.mxu0 %v2366_v11 }
  0xc9   : > { %1177 = vmatprep.subr.bf16.mxu0 %v2371_v12 }
  0xcc   : > { %1178 = vmatpush2.bf16.msra.mxu0 %v2369_v13 }
  0xcd   : > { %1179 = vmatprep.subr.bf16.mxu0 %v2374_v14 }
  0xd0   : > { %1180 = vmatpush2.bf16.msra.mxu0 %v2372_v15  ;;  %v1217_v15 = vrot.slane %v1212_v7, %v2786_v47 }
  0xd1   : > { %1181 = vmatprep.subr.bf16.mxu0 %v2377_v16 }
  0xd4   : > { %1182 = vmatpush2.bf16.msra.mxu0 %v2375_v17 }
  0xd5   : > { %1183 = vmatprep.subr.bf16.mxu0 %v2380_v18 }
  0xd8   : > { %1184 = vmatpush2.bf16.msra.mxu0 %v2378_v19  ;;  %v1221_v19 = vrot.slane %v1212_v7, %v2789_v48 }
  0xd9   : > { %2139 = vmatprep.subr.bf16.mxu0 %v2383_v23 }
  0xdb   : > { %2018 = vmatmul.mubr.msk.bf16.vlgmr.msra.gmra.mxu0 %vm2839_vm6, %v2017_v37  ;;  %v2397_v37 = vld [vmem:[#allocation7 + $0x58] sm:$0xff]  }
  0xdc   : > { %2140 = vmatpush3.bf16.msra.mxu0 %v2384_v24  ;;  %2103 = vmatprep.subr.bf16.mxu1 %v2397_v37 }
  0xdd   : > { %2141 = vmatprep.subr.bf16.mxu0 %v2387_v26  ;;  %2104 = vmatpush3.bf16.msra.mxu1 %v2398_v38 }
  0xde   : > { %2105 = vmatprep.subr.bf16.mxu1 %v2401_v41 }
  0xe0   : > { %2142 = vmatpush3.bf16.msra.mxu0 %v2388_v28 }
  0xe1   : > { %2143 = vmatprep.subr.bf16.mxu0 %v2391_v30  ;;  %2106 = vmatpush3.bf16.msra.mxu1 %v2402_v43 }
  0xe2   : > { %2107 = vmatprep.subr.bf16.mxu1 %v2405_v46  ;;  %v2414_v46 = vld [vmem:[#allocation7 + $0xb8] sm:$0xff]  }
  0xe4   : > { %2144 = vmatpush3.bf16.msra.mxu0 %v2392_v32 }
  0xe5   : > { %2145 = vmatprep.subr.bf16.mxu0 %v2395_v34  ;;  %2108 = vmatpush3.bf16.msra.mxu1 %v2406_v49 }
  0xe6   : > { %2109 = vmatprep.subr.bf16.mxu1 %v2409_v52 }
  0xe8   : > { %2146 = vmatpush3.bf16.msra.mxu0 %v2396_v36 }
  0xe9   : > { %2147 = vmatprep.subr.bf16.mxu0 %v2399_v39  ;;  %2110 = vmatpush3.bf16.msra.mxu1 %v2410_v53  ;;  %v2417_v53 = vld [vmem:[#allocation7 + $0xe8] sm:$0xff]  }
  0xea   : > { %2117 = vmatprep.subr.bf16.mxu1 %v2413_v57  ;;  %v2420_v57 = vld [vmem:[#allocation7 + $0xa0] sm:$0xff]  }
  0xec   : > { %2148 = vmatpush3.bf16.msra.mxu0 %v2400_v40 }
  0xed   : > { %2149 = vmatprep.subr.bf16.mxu0 %v2403_v44 }
  0xf0   : > { %2150 = vmatpush3.bf16.msra.mxu0 %v2404_v45 }
  0xf1   : > { %2151 = vmatprep.subr.bf16.mxu0 %v2407_v50 }
  0xf4   : > { %2152 = vmatpush3.bf16.msra.mxu0 %v2408_v51  ;;  %v2415_v51 = vld [vmem:[#allocation7 + $0xf0] sm:$0xff]  }
  0xf5   : > { %2153 = vmatprep.subr.bf16.mxu0 %v2411_v55  ;;  %v2418_v55 = vld [vmem:[#allocation7 + $0xa8] sm:$0xff]  }
  0xf8   : > { %2154 = vmatpush3.bf16.msra.mxu0 %v2412_v56  ;;  %v2419_v56 = vld [vmem:[#allocation7 + $0xe0] sm:$0xff]  }
 0x15b   : > { %v1101_v58 = vpop.f32.mrf.mxu0 }
 0x15c   : > { %v1144_v60 = vpop.f32.mrf.mxu1 }
 0x15d   : > { %v1103_v59 = vpop.f32.mrf.mxu0  ;;  %v1145_v1 = vadd.f32 %v1144_v60, %v1101_v58  ;;  %v2421_v58 = vld [vmem:[#allocation7 + $0xd8] sm:$0xff]   ;;  %v2425_v60 = vld [vmem:[#allocation7 + $0xc8] sm:$0xff]  }
 0x15e   : > { %v1146_v62 = vpop.f32.mrf.mxu1 }
 0x15f   : > { %v1105_v61 = vpop.f32.mrf.mxu0  ;;  %v1147_v4 = vadd.f32 %v1146_v62, %v1103_v59  ;;  %v2422_v59 = vld [vmem:[#allocation7 + $0x98] sm:$0xff]   ;;  %v2427_v62 = vld [vmem:[#allocation7 + $0xc0] sm:$0xff]  }
 0x160   : > { %v1148_v2 = vpop.f32.mrf.mxu1 }
 0x161   : > { %v1107_v63 = vpop.f32.mrf.mxu0  ;;  %v1149_v10 = vadd.f32 %v1148_v2, %v1105_v61  ;;  %v2426_v61 = vld [vmem:[#allocation7 + $0x88] sm:$0xff]  }
 0x162   : > { %v1150_v11 = vpop.f32.mrf.mxu1 }
 0x163   : > { %v1151_v17 = vadd.f32 %v1150_v11, %v1107_v63  ;;  %v2428_v63 = vld [vmem:[#allocation7 + $0x80] sm:$0xff]  }
 0x19b   : > { %v1187_v3 = vpop.f32.mrf.mxu0 }
 0x19c   : > { %v1188_v5 = vadd.f32 %v1187_v3, %v1145_v1 }
 0x19d   : > { %v1189_v8 = vpop.f32.mrf.mxu0 }
 0x19e   : > { %v1190_v12 = vadd.f32 %v1189_v8, %v1147_v4  ;;  %v1208_v14 = vmul.f32 %v1201_v6, %v1188_v5 }
 0x19f   : > { %v1191_v13 = vpop.f32.mrf.mxu0 }
 0x1a0   : > { %v1192_v16 = vadd.f32 %v1191_v13, %v1149_v10  ;;  %v1209_v18 = vmul.f32 %v1205_v9, %v1190_v12  ;;  %v1224_v24 = vadd.f32 %v1217_v15, %v1208_v14 }
 0x1a1   : > { %v1193_v21 = vpop.f32.mrf.mxu0 }
 0x1a2   : > { %v1210_v22 = vmul.f32 %v1201_v6, %v1192_v16  ;;  %v1194_v23 = vadd.f32 %v1193_v21, %v1151_v17  ;;  %v1225_v26 = vadd.f32 %v1221_v19, %v1209_v18  ;;  %v1228_v31 = vrot.slane %v1224_v24, 7  ;;  %v2083_v16 = vld [vmem:[%s2949_s7] ss:$0 sm:$0xff] }
 0x1a3   : > { %v1240_v32 = vrot.slane %v1224_v24, 1 }
 0x1a4   : > { %v1226_v25 = vadd.f32 %v1217_v15, %v1210_v22  ;;  %v1211_v27 = vmul.f32 %v1205_v9, %v1194_v23  ;;  %v1229_v33 = vrot.slane %v1225_v26, 7  ;;  %v1241_v34 = vrot.slane %v1225_v26, 1  ;;  %v2084_v22 = vld [vmem:[%s2950_s8] ss:$0 sm:$0xff] }
 0x1a6   : > { %v1230_v28 = vrot.slane %v1226_v25, 7  ;;  %v1242_v29 = vrot.slane %v1226_v25, 1  ;;  %v1227_v30 = vadd.f32 %v1221_v19, %v1211_v27  ;;  %v1254_v0 = vpack.c.bf16 %v1226_v25, %v1224_v24 }
 0x1a8   : > { %v1231_v47 = vrot.slane %v1227_v30, 7  ;;  %v1243_v35 = vrot.slane %v1227_v30, 1  ;;  %v1232_v36 = vsel %vm455_vm0, %v1228_v31, %v1230_v28  ;;  %v1234_v48 = vsel %vm455_vm0, %v1230_v28, %v1228_v31 }
 0x1a9   : > { %v1244_v37 = vsel %vm472_vm4, %v1240_v32, %v1242_v29  ;;  %v1246_v38 = vsel %vm472_vm4, %v1242_v29, %v1240_v32  ;;  %v2073_v49 = vpack.c.bf16 %v1232_v36, %v1234_v48  ;;  %v1255_v52 = vpack.c.bf16 %v1227_v30, %v1225_v26 }
 0x1aa   : > { %v1233_v39 = vsel %vm455_vm0, %v1229_v33, %v1231_v47  ;;  %v1235_v40 = vsel %vm455_vm0, %v1231_v47, %v1229_v33  ;;  %v1245_v41 = vsel %vm472_vm4, %v1241_v34, %v1243_v35  ;;  %v1247_v43 = vsel %vm472_vm4, %v1243_v35, %v1241_v34 }
 0x1ab   : > { %v2069_v44 = vpack.c.bf16 %v1233_v39, %v1235_v40  ;;  %v2077_v45 = vpack.c.bf16 %v1247_v43, %v1245_v41  ;;  %v2081_v50 = vpack.c.bf16 %v1246_v38, %v1244_v37 }
 0x1ad   : > { %2070 = vmatprep.mubr.msk.bf16.mxu1 %vm2812_vm3, %v2069_v44  ;;  %2078 = vmatprep.mubr.msk.bf16.mxu0 %vm2839_vm6, %v2077_v45 }
 0x1ae   : > { %2074 = vmatmul.mubr.msk.bf16.vlgmr.msra.gmra.mxu1 %vm2812_vm3, %v2073_v49  ;;  %2082 = vmatmul.mubr.msk.bf16.vlgmr.msra.gmra.mxu0 %vm2839_vm6, %v2081_v50 }
 0x1af   : > { %2118 = vmatpush3.bf16.msra.mxu1 %v2414_v46  ;;  %1715 = vmatprep.mubr.bf16.mxu1 %v1255_v52 }
 0x1b0   : > { %2119 = vmatprep.subr.bf16.mxu1 %v2415_v51 }
 0x1b3   : > { %2120 = vmatpush3.bf16.msra.mxu1 %v2416_v42 }
 0x1b4   : > { %2121 = vmatprep.subr.bf16.mxu1 %v2417_v53 }
 0x1b7   : > { %2122 = vmatpush3.bf16.msra.mxu1 %v2418_v55 }
 0x1b8   : > { %2123 = vmatprep.subr.bf16.mxu1 %v2419_v56 }
 0x1bb   : > { %2124 = vmatpush3.bf16.msra.mxu1 %v2420_v57 }
 0x1bc   : > { %2125 = vmatprep.subr.bf16.mxu1 %v2421_v58 }
 0x1bf   : > { %2126 = vmatpush3.bf16.msra.mxu1 %v2422_v59 }
 0x1c0   : > { %2127 = vmatprep.subr.bf16.mxu1 %v2423_v20 }
 0x1c3   : > { %2128 = vmatpush3.bf16.msra.mxu1 %v2424_v54 }
 0x1c4   : > { %2129 = vmatprep.subr.bf16.mxu1 %v2425_v60 }
 0x1c7   : > { %2130 = vmatpush3.bf16.msra.mxu1 %v2426_v61 }
 0x1c8   : > { %2131 = vmatprep.subr.bf16.mxu1 %v2427_v62 }
 0x1cb   : > { %2132 = vmatpush3.bf16.msra.mxu1 %v2428_v63 }
 0x1ce   : > { %1716 = vmatmul.mubr.bf16.vlgmr.msra.gmra.mxu1 %v1254_v0 }
 0x26e   : > { %v2111_v1 = vpop.f32.mrf.mxu1  ;;  %v2155_v3 = vpop.f32.mrf.mxu0 }
 0x270   : > { %v2112_v2 = vpop.f32.mrf.mxu1  ;;  %v2156_v5 = vpop.f32.mrf.mxu0 }
 0x271   : > { %v2113_v10 = vadd.f32 %v2112_v2, %v2111_v1  ;;  %v2157_v13 = vadd.f32 %v2156_v5, %v2155_v3 }
 0x272   : > { %v2114_v4 = vpop.f32.mrf.mxu1  ;;  %v2158_v8 = vpop.f32.mrf.mxu0 }
 0x274   : > { %v2115_v6 = vpop.f32.mrf.mxu1  ;;  %v2159_v15 = vpop.f32.mrf.mxu0 }
 0x275   : > { %v2116_v18 = vadd.f32 %v2115_v6, %v2114_v4  ;;  %v2160_v23 = vadd.f32 %v2159_v15, %v2158_v8 }
 0x28e   : > { %v2133_v7 = vpop.f32.mrf.mxu1 }
 0x290   : > { %v2134_v9 = vpop.f32.mrf.mxu1 }
 0x291   : > { %v2135_v11 = vadd.f32 %v2134_v9, %v2133_v7 }
 0x292   : > { %v2136_v12 = vpop.f32.mrf.mxu1 }
 0x293   : > { %v1718_v14 = vadd.f32 %v2135_v11, %v2113_v10 }
 0x294   : > { %v2137_v17 = vpop.f32.mrf.mxu1 }
 0x295   : > { %v1759_v19 = vadd.f32 %v2157_v13, %v1718_v14  ;;  %v2138_v21 = vadd.f32 %v2137_v17, %v2136_v12 }
 0x297   : > { %v1772_v24 = vmul.f32 %v2083_v16, %v1759_v19  ;;  %v1721_v25 = vadd.f32 %v2138_v21, %v2116_v18 }
 0x299   : > { %v1781_v26 = vadd.f32 %v2084_v22, %v1772_v24  ;;  %v1762_v27 = vadd.f32 %v2160_v23, %v1721_v25 }
 0x29b   : > { %v1783_v28 = vmax.f32 %v1781_v26, 0.0  ;;  %v1773_v29 = vmul.f32 %v2083_v16, %v1762_v27 }
 0x29d   : > { %1785 = vst [vmem:[%s380_s15] sm:$0xff] %v1783_v28  ;;  %v1782_v30 = vadd.f32 %v2084_v22, %v1773_v29 }
 0x29f   : > { %v1784_v31 = vmax.f32 %v1782_v30, 0.0 }
 0x2a1   : > { %1786 = vst [vmem:[%s380_s15 + $0x8] sm:$0xff] %v1784_v31 }
 0x2a2   : > { %2522 = shalt.err (!%p2519_p9)
}
 0x2a3   : > { %s2523_s1 = scalar_lea.hbm %s2897_s23, 256  ;;  %s2527_s27 = scalar_lea.hbm %s2951_s9, 512 }
 0x2a4   : > { %p2524_p13 = scmp.ne.s32.totalorder %s2897_s23, %s2523_s1  ;;  %p2528_p4 = scmp.lt.s32.totalorder %s2897_s23, %s2951_s9 }
 0x2a5   : > { %p2529_p8 = scmp.lt.s32.totalorder %s2527_s27, %s2523_s1 }
 0x2a6   : > { %p2525_p5 = pnand %p2524_p13, %p2976_p10 }
 0x2a7   : > { %p2530_p7 = por %p2529_p8, %p2528_p4 }
 0x2a8   : > { %p2526_p0 = pneg %p2525_p5 }
 0x2aa   : > { %p2531_p11 = pnand %p2530_p7, %p2526_p0 }
 0x2ac   : > { %2534 = shalt.err (!%p2531_p11)
}
 0x2ad   : > { %s2590_s14 = smov 128   ;;  %s2591_s19 = smov 8  }
 0x2ae   : > { %2171 = dma.vmem_to_hbm [thread:$0]  (%p2976_p10), %s2899_s17, 256, %s2897_s23, %s1788_s24, %s2590_s14, %s2590_s14, %s2591_s19  }
 0x2af PF: > { %s1816_s18 = sand.u32 1, %s2565_s30   ;;  %p2977_p1 = scmp.ne.s32.totalorder %s2959_s16, 0 }
 0x2b0   : > { %p2978_p2 = scmp.ge.s32.totalorder %s2577_s12, 2  ;;  %s1817_s13 = scalar_lea.sflag [#allocation4], %s1816_s18 }
 0x2b2   : > { %p2185_p6 = pnand %p2978_p2, %p2977_p1 }
 0x2b4   : > { %p2186_p12 = pneg %p2185_p6 }
 0x2b6   : > { %2560 = dma.done.wait (%p2186_p12), %s1817_s13, 256  }
 0x2b7   : > { %2562 = vsyncadd (%p2186_p12), %s1817_s13, 4294967040  ;;  %s2979_s20 = sld [smem:[#allocation12_spill]]  ;;  %p23_p3 = scmp.ge.s32.totalorder %s2714_s21, 4  }
 0x2b8   : > { %s2980_s30 = smov %s2569_s10  ;;  %s2981_s10 = smov %s2573_s11 }
 0x2b9   : > { %s2983_s12 = smov %s2714_s21  ;;  %25 = sbr.rel (!%p23_p3) target bundleno = 9 (0x9), region = 109 }
 0x2bd   : > { %s2982_s11 = smov %s2979_s20 }
 0x2be   :  { %1822 = vsyncpa [#allocation3], 1 }
 0x2bf   :  { %1824 = vsyncpa [#allocation3 + $0x1], 1 }
 0x2c0   :  { %1825 = vsyncpa [#allocation6], 1 }
 0x2c1   :  { %1826 = vsyncpa [#allocation4], 1 }
 0x2c2   :  { %1828 = vsyncpa [#allocation4 + $0x1], 1 }

</bundles_post_ra>
